<compile_context>
chip_gen: v7x
topology: tpu7x:2x2x1
jax: 0.10.0
libtpu: 0.0.40
codegen_flags: <defaults>
</compile_context>

<pallas_src>
import jax
import jax.numpy as jnp
from jax.experimental import pallas as pl
from jax.experimental.pallas import tpu as pltpu

EPS = 1e-5
_VMEM_TILE_BUDGET = 8 * 1024 * 1024  # bytes for the double-buffered input tile


def _pick_tile(hw, c, itemsize):
    """Largest multiple-of-128 divisor of hw whose double-buffered (c, T) tile fits."""
    candidates = [d for d in range(128, hw + 1, 128) if hw % d == 0]
    if not candidates:
        return hw  # hw < 128 or no 128-divisor: block == full dim (still legal)
    best = candidates[0]
    for d in candidates:
        if 2 * c * d * itemsize <= _VMEM_TILE_BUDGET:
            best = d
    return best


def _su_conv_stats_kernel(w_ref, x_ref, z_ref, stats_ref):
    # w_ref:     (C,)           SMEM f32  1x1-conv weights
    # x_ref:     (1, C, T)      VMEM      input tile (native NCHW layout)
    # z_ref:     (1, 1, T)      VMEM f32  conv output tile (lane-dense)
    # stats_ref: (1, 1, 2, 128) VMEM f32  [tile_mean, tile_M2] broadcast over lanes
    c_dim = x_ref.shape[1]

    # Channel reduction as a scalar-broadcast FMA chain (stays in the VALU slot,
    # minimal live vregs).  For very large C an MXU (1,C)@(C,T) dot would be
    # preferable; C is small for this module.
    z = x_ref[0, 0:1, :].astype(jnp.float32) * w_ref[0]
    for c in range(1, c_dim):
        z = z + x_ref[0, c:c + 1, :].astype(jnp.float32) * w_ref[c]

    # Per-tile Welford-style partial stats (combined exactly in the wrapper).
    t_count = z.shape[1]
    t_mean = jnp.sum(z) / t_count
    t_m2 = jnp.sum(jnp.square(z - t_mean))

    z_ref[...] = z.reshape(z_ref.shape)
    sel = jax.lax.broadcasted_iota(jnp.int32, stats_ref.shape, 2)
    stats_ref[...] = jnp.where(sel == 0, t_mean, t_m2)


def _su_bn_sigmoid_kernel(p_ref, z_ref, o_ref):
    # p_ref: (2,) SMEM f32 = [scale, shift]; hot loop is a single FMA + sigmoid.
    y = z_ref[...] * p_ref[0] + p_ref[1]
    o_ref[...] = jax.nn.sigmoid(y).astype(o_ref.dtype)


def su_forward(x_nchw, conv_w, gamma, beta):
    """x_nchw: (N, C, H, W); conv_w: (1, C, 1, 1); gamma, beta: scalars."""
    n, c, h, w = x_nchw.shape
    hw = h * w
    m_total = n * hw

    x3d = x_nchw.reshape(n, c, hw)                   # contiguous: no HBM transpose
    w_smem = conv_w.reshape(c).astype(jnp.float32)   # (C,) scalar weights -> SMEM

    t1 = _pick_tile(hw, c, jnp.dtype(x_nchw.dtype).itemsize)
    num_t1 = hw // t1

    z, stats = pl.pallas_call(
        _su_conv_stats_kernel,
        out_shape=(
            jax.ShapeDtypeStruct((n, 1, hw), jnp.float32),
            jax.ShapeDtypeStruct((n, num_t1, 2, 128), jnp.float32),
        ),
        grid=(n, num_t1),
        in_specs=[
            pl.BlockSpec(memory_space=pltpu.MemorySpace.SMEM),
            pl.BlockSpec((1, c, t1), lambda i, j: (i, 0, j)),
        ],
        out_specs=(
            pl.BlockSpec((1, 1, t1), lambda i, j: (i, 0, j)),
            pl.BlockSpec((1, 1, 2, 128), lambda i, j: (i, j, 0, 0)),
        ),
        compiler_params=pltpu.CompilerParams(
            dimension_semantics=("parallel", "parallel")),
    )(w_smem, x3d)

    # Exact combine of per-tile (mean, M2) via Chan's parallel formula; every
    # tile covers t1 pixels.  Tiny (n*num_t1 scalars), runs as plain XLA.
    tile_mean = stats[:, :, 0, 0]
    tile_m2 = stats[:, :, 1, 0]
    mean = jnp.mean(tile_mean)
    var = (jnp.sum(tile_m2) + t1 * jnp.sum(jnp.square(tile_mean - mean))) / m_total
    inv_std = jax.lax.rsqrt(var + EPS)
    scale = jnp.float32(gamma) * inv_std
    shift = jnp.float32(beta) - mean * scale
    params = jnp.stack([scale, shift]).astype(jnp.float32)     # (2,) -> SMEM

    t2 = _pick_tile(hw, 1, 4)
    num_t2 = hw // t2

    out = pl.pallas_call(
        _su_bn_sigmoid_kernel,
        out_shape=jax.ShapeDtypeStruct((n, 1, hw), x_nchw.dtype),
        grid=(n, num_t2),
        in_specs=[
            pl.BlockSpec(memory_space=pltpu.MemorySpace.SMEM),
            pl.BlockSpec((1, 1, t2), lambda i, j: (i, 0, j)),
        ],
        out_specs=pl.BlockSpec((1, 1, t2), lambda i, j: (i, 0, j)),
        compiler_params=pltpu.CompilerParams(
            dimension_semantics=("parallel", "parallel")),
    )(params, z)

    # (N, 1, HW) -> (N, 1, H, W): contiguous reshape, free.
    return out.reshape(n, 1, h, w)


if __name__ == "__main__":
    key = jax.random.PRNGKey(0)
    k_x, k_w = jax.random.split(key)

    N, C, H, W = 2, 4, 16, 16
    x = jax.random.normal(k_x, (N, C, H, W), dtype=jnp.float32)

    # Deterministic Conv2d weight init (PyTorch kaiming-uniform bound 1/sqrt(fan_in))
    bound = 1.0 / (C ** 0.5)
    conv_w = jax.random.uniform(k_w, (1, C, 1, 1), minval=-bound, maxval=bound,
                                dtype=jnp.float32)
    gamma = 1.0  # BatchNorm2d default affine init
    beta = 0.0

    out = jax.block_until_ready(su_forward(x, conv_w, gamma, beta))

    # Pure-JAX reference
    z = jnp.einsum("nchw,c->nhw", x, conv_w.reshape(-1))
    m = jnp.mean(z)
    v = jnp.mean((z - m) ** 2)
    ref = jax.nn.sigmoid((z - m) / jnp.sqrt(v + EPS) * gamma + beta)[:, None, :, :]

    assert out.shape == (N, 1, H, W)
    assert jnp.allclose(out, ref, atol=1e-5, rtol=1e-5)
    print("KERNEL_OK")
</pallas_src>

<mosaic_0001>
module attributes {stable_mosaic.version = 11 : i64} {
  func.func @_su_conv_stats_kernel(%arg0: i32, %arg1: i32, %arg2: memref<4xf32, #tpu.memory_space<smem>>, %arg3: memref<1x4x256xf32, #tpu.memory_space<vmem>>, %arg4: memref<1x1x256xf32, #tpu.memory_space<vmem>>, %arg5: memref<1x1x2x128xf32, #tpu.memory_space<vmem>>) attributes {dimension_semantics = [#tpu.dimension_semantics<parallel>, #tpu.dimension_semantics<parallel>], iteration_bounds = array<i64: 2, 1>, scalar_prefetch = 0 : i64, scratch_operands = 0 : i64, tpu.core_type = #tpu.core_type<tc>, window_params = [{transform_indices = @transform_0, window_bounds = array<i64: 4>}, {transform_indices = @transform_1, window_bounds = array<i64: 1, 4, 256>}, {transform_indices = @transform_2, window_bounds = array<i64: 1, 1, 256>}, {transform_indices = @transform_3, window_bounds = array<i64: 1, 1, 2, 128>}]} {
    %c0 = arith.constant 0 : index
    %c0_0 = arith.constant 0 : index
    %c0_1 = arith.constant 0 : index
    %0 = vector.load %arg3[%c0, %c0_0, %c0_1] : memref<1x4x256xf32, #tpu.memory_space<vmem>>, vector<1x1x256xf32>
    %1 = vector.shape_cast %0 : vector<1x1x256xf32> to vector<1x256xf32>
    %c0_2 = arith.constant 0 : index
    %2 = memref.load %arg2[%c0_2] : memref<4xf32, #tpu.memory_space<smem>>
    %3 = vector.broadcast %2 : f32 to vector<1x256xf32>
    %4 = arith.mulf %1, %3 : vector<1x256xf32>
    %c0_3 = arith.constant 0 : index
    %c1 = arith.constant 1 : index
    %c0_4 = arith.constant 0 : index
    %5 = vector.load %arg3[%c0_3, %c1, %c0_4] : memref<1x4x256xf32, #tpu.memory_space<vmem>>, vector<1x1x256xf32>
    %6 = vector.shape_cast %5 : vector<1x1x256xf32> to vector<1x256xf32>
    %c1_5 = arith.constant 1 : index
    %7 = memref.load %arg2[%c1_5] : memref<4xf32, #tpu.memory_space<smem>>
    %8 = vector.broadcast %7 : f32 to vector<1x256xf32>
    %9 = arith.mulf %6, %8 : vector<1x256xf32>
    %10 = arith.addf %4, %9 : vector<1x256xf32>
    %c0_6 = arith.constant 0 : index
    %c2 = arith.constant 2 : index
    %c0_7 = arith.constant 0 : index
    %11 = vector.load %arg3[%c0_6, %c2, %c0_7] : memref<1x4x256xf32, #tpu.memory_space<vmem>>, vector<1x1x256xf32>
    %12 = vector.shape_cast %11 : vector<1x1x256xf32> to vector<1x256xf32>
    %c2_8 = arith.constant 2 : index
    %13 = memref.load %arg2[%c2_8] : memref<4xf32, #tpu.memory_space<smem>>
    %14 = vector.broadcast %13 : f32 to vector<1x256xf32>
    %15 = arith.mulf %12, %14 : vector<1x256xf32>
    %16 = arith.addf %10, %15 : vector<1x256xf32>
    %c0_9 = arith.constant 0 : index
    %c3 = arith.constant 3 : index
    %c0_10 = arith.constant 0 : index
    %17 = vector.load %arg3[%c0_9, %c3, %c0_10] : memref<1x4x256xf32, #tpu.memory_space<vmem>>, vector<1x1x256xf32>
    %18 = vector.shape_cast %17 : vector<1x1x256xf32> to vector<1x256xf32>
    %c3_11 = arith.constant 3 : index
    %19 = memref.load %arg2[%c3_11] : memref<4xf32, #tpu.memory_space<smem>>
    %20 = vector.broadcast %19 : f32 to vector<1x256xf32>
    %21 = arith.mulf %18, %20 : vector<1x256xf32>
    %22 = arith.addf %16, %21 : vector<1x256xf32>
    %23 = vector.shape_cast %22 : vector<1x256xf32> to vector<1x1x256xf32>
    %cst = arith.constant dense<0.000000e+00> : vector<1xf32>
    %24 = vector.multi_reduction <add>, %23, %cst [1, 2] : vector<1x1x256xf32> to vector<1xf32>
    %25 = vector.shape_cast %24 : vector<1xf32> to vector<1x1x1xf32>
    %26 = vector.extract %25[0, 0, 0] : f32 from vector<1x1x1xf32>
    %cst_12 = arith.constant 2.560000e+02 : f32
    %27 = arith.divf %26, %cst_12 : f32
    %28 = vector.broadcast %27 : f32 to vector<1x256xf32>
    %29 = arith.subf %22, %28 : vector<1x256xf32>
    %30 = arith.mulf %29, %29 : vector<1x256xf32>
    %31 = vector.shape_cast %30 : vector<1x256xf32> to vector<1x1x256xf32>
    %cst_13 = arith.constant dense<0.000000e+00> : vector<1xf32>
    %32 = vector.multi_reduction <add>, %31, %cst_13 [1, 2] : vector<1x1x256xf32> to vector<1xf32>
    %33 = vector.shape_cast %32 : vector<1xf32> to vector<1x1x1xf32>
    %34 = vector.extract %33[0, 0, 0] : f32 from vector<1x1x1xf32>
    %35 = vector.shape_cast %22 : vector<1x256xf32> to vector<1x1x256xf32>
    %c0_14 = arith.constant 0 : index
    %c0_15 = arith.constant 0 : index
    %c0_16 = arith.constant 0 : index
    %36 = vector.load %arg4[%c0_14, %c0_15, %c0_16] : memref<1x1x256xf32, #tpu.memory_space<vmem>>, vector<1x1x256xf32>
    tpu.vector_store %arg4[%c0_14, %c0_15, %c0_16], %35 {strides = array<i32>} : memref<1x1x256xf32, #tpu.memory_space<vmem>>, vector<1x1x256xf32>,
    %37 = tpu.iota {dimensions = array<i32: 2>} : vector<1x1x2x128xi32>
    %c0_i32 = arith.constant 0 : i32
    %38 = vector.broadcast %c0_i32 : i32 to vector<1x1x2x128xi32>
    %39 = arith.cmpi eq, %37, %38 : vector<1x1x2x128xi32>
    %40 = vector.broadcast %27 : f32 to vector<1x1x2x128xf32>
    %41 = vector.broadcast %34 : f32 to vector<1x1x2x128xf32>
    %42 = arith.select %39, %40, %41 : vector<1x1x2x128xi1>, vector<1x1x2x128xf32>
    %c0_17 = arith.constant 0 : index
    %c0_18 = arith.constant 0 : index
    %c0_19 = arith.constant 0 : index
    %c0_20 = arith.constant 0 : index
    %43 = vector.load %arg5[%c0_17, %c0_18, %c0_19, %c0_20] : memref<1x1x2x128xf32, #tpu.memory_space<vmem>>, vector<1x1x2x128xf32>
    tpu.vector_store %arg5[%c0_17, %c0_18, %c0_19, %c0_20], %42 {strides = array<i32>} : memref<1x1x2x128xf32, #tpu.memory_space<vmem>>, vector<1x1x2x128xf32>,
    return
  }
  func.func @transform_0(%arg0: i32, %arg1: i32) -> i32 {
    %c0_i32 = arith.constant 0 : i32
    %c0_i32_0 = arith.constant 0 : i32
    return %c0_i32 : i32
  }
  func.func @transform_1(%arg0: i32, %arg1: i32) -> (i32, i32, i32) {
    %c0_i32 = arith.constant 0 : i32
    %c0_i32_0 = arith.constant 0 : i32
    return %arg0, %c0_i32, %arg1 : i32, i32, i32
  }
  func.func @transform_2(%arg0: i32, %arg1: i32) -> (i32, i32, i32) {
    %c0_i32 = arith.constant 0 : i32
    %c0_i32_0 = arith.constant 0 : i32
    return %arg0, %c0_i32, %arg1 : i32, i32, i32
  }
  func.func @transform_3(%arg0: i32, %arg1: i32) -> (i32, i32, i32, i32) {
    %c0_i32 = arith.constant 0 : i32
    %c0_i32_0 = arith.constant 0 : i32
    %c0_i32_1 = arith.constant 0 : i32
    return %arg0, %arg1, %c0_i32, %c0_i32_0 : i32, i32, i32, i32
  }
}

</mosaic_0001>

<bundles_post_ra>
// kernel: tpu_custom_call.1
= control target key start
LH: loop header
LB: loop body
LE: loop exit
PB: predicated region body
PF: predicated region fallthrough
CT: control target
= control target key end

     0   :  { %9 = vsyncpa [#allocation5], 0  ;;  %s1047_s0 = inlined_call_operand.hbm [shape: f32[4], index: 0, kind: input, shape index: {}]   ;;  %s1048_s1 = inlined_call_operand.hbm [shape: f32[2,4,256], index: 1, kind: input, shape index: {}]   ;;  %s1049_s2 = inlined_call_operand.hbm [shape: f32[2,1,256], index: 2, kind: output, shape index: {0}]   ;;  %s1050_s3 = inlined_call_operand.hbm [shape: f32[2,1,2,128], index: 3, kind: output, shape index: {1}]  }
   0x1   :  { %10 = vsyncpa [#allocation3], 0 }
   0x2   :  { %12 = vsyncpa [#allocation3 + $0x1], 0 }
   0x3   :  { %13 = vsyncpa [#allocation4], 0 }
   0x4   :  { %15 = vsyncpa [#allocation4 + $0x1], 0 }
   0x5   :  { %16 = vsyncpa [#allocation9], 0 }
   0x6   :  { %18 = vsyncpa [#allocation9 + $0x1], 0  ;;  %s780_s12 = smov 0   ;;  %s782_s13 = smov 0  }
   0x7   :  { %s784_s14 = smov 0   ;;  %s786_s15 = smov 0  }
   0x8   :  { %s788_s16 = smov 0   ;;  %s790_s17 = smov 0  }
   0x9 LB: > { %s483_s18 = sadd.s32 4294967295, %s754_s17   ;;  %s484_s19 = sadd.s32 4294967294, %s754_s17   ;;  %s754_s17 = sphi %s790_s17, %s24_s17   ;;  %s750_s16 = sphi %s788_s16, %s1074_s16   ;;  %s746_s15 = sphi %s786_s15, %s1073_s15   ;;  %s742_s14 = sphi %s784_s14, %s1072_s14   ;;  %s738_s13 = sphi %s782_s13, %s1071_s13   ;;  %s734_s12 = sphi %s780_s12, %s1070_s12  }
   0xa   : > { %p79_p0 = scmp.ne.s32.totalorder %s738_s13, %s734_s12  ;;  %p814_p1 = scmp.eq.s32.totalorder %s483_s18, 0 }
   0xb   : > { %p818_p2 = scmp.eq.s32.totalorder %s483_s18, 1  ;;  %p111_p3 = scmp.eq.s32.totalorder %s484_s19, 1 }
   0xc   : > { %s1055_s20 = scalar_select %p814_p1, 1, 0 }
   0xd   : > { %p824_p4 = por %p814_p1, %p79_p0  ;;  %p485_p5 = scmp.ge.s32.totalorder %s754_s17, 1 }
   0xe   : > { %p829_p6 = por %p111_p3, %p79_p0  ;;  %p146_p7 = scmp.lt.s32.totalorder %s754_s17, 3 }
   0xf   : > { %s1057_s22 = scalar_select %p824_p4, 1, 0 }
  0x10   : > { %s1058_s23 = scalar_select %p829_p6, 1, 0 }
  0x11   : > { %p834_p8 = pnand %p485_p5, %p146_p7  ;;  %s36_s25 = sadd.s32 1, %s750_s16 }
  0x12   : > { %p848_p12 = scmp.ge.s32.totalorder %s36_s25, 2  ;;  %s66_s28 = sadd.s32 1, %s742_s14 }
  0x13   : > { %p525_p10 = pneg %p834_p8  ;;  %p73_p13 = scmp.ne.s32.totalorder %s742_s14, %s738_s13 }
  0x14   : > { %p74_p0 = scmp.eq.s32.totalorder %s754_s17, 0  ;;  %s593_s4 = scalar_lea.hbm %s1047_s0, 16 }
  0x15   : > { %p844_p11 = pnand %p525_p10, %p814_p1  ;;  %p594_p3 = scmp.ne.s32.totalorder %s1047_s0, %s593_s4 }
  0x16   : > { %p600_p9 = scmp.lt.u32.totalorder %s593_s4, %s1047_s0 }
  0x17   : > { %p595_p5 = pneg %p844_p11 }
  0x19   : > { %p596_p7 = pnand %p595_p5, %p594_p3 }
  0x1b   : > { %p597_p10 = pneg %p596_p7 }
  0x1d   : > { %p602_p6 = pnand %p600_p9, %p597_p10 }
  0x1f   : > { %605 = shalt.err (!%p602_p6)
}
  0x20   : > { %s756_s9 = smov [#allocation2]   ;;  %s1076_s25 = smov (%p848_p12, %s36_s25), 0 }
  0x21   : > { %528 = dma.hbm_to_smem (!%p844_p11), %s1047_s0, 16, %s756_s9, [#allocation5]  }
  0x22   : > { %p879_p6 = por %p74_p0, %p73_p13  ;;  %p888_p9 = por %p818_p2, %p73_p13 }
  0x23   : > { %s61_s26 = ssub.s32 %s750_s16, %s1076_s25  ;;  %p541_p3 = scmp.lt.s32.totalorder %s754_s17, 2 }
  0x24   : > { %s1063_s19 = scalar_select %p888_p9, 1, 0 }
  0x25   : > { %p64_p5 = scmp.eq.s32.totalorder %s61_s26, 0  ;;  %s168_s29 = sand.u32 1, %s742_s14  }
  0x26   : > { %s488_s27 = sshll.u32 %s168_s29, 3  ;;  %s509_s4 = sshll.u32 %s750_s16, 7 }
  0x27   : > { %s897_s30 = scalar_select %p64_p5, %s742_s14, %s66_s28  }
  0x28   : > { %s903_s7 = scalar_lea.hbm %s1048_s1, %s509_s4  ;;  %s172_s21 = scalar_lea.vmem [#allocation6], %s488_s27 }
  0x29   : > { %s182_s8 = sshll.u32 %s172_s21, 4  ;;  %p909_p2 = pnand %p541_p3, %p879_p6  ;;  %s905_s8 = int_to_ptr.vmem [resolvable:$true] %s182_s8 }
  0x2a   : > { %s169_s28 = scalar_lea.sflag [#allocation3], %s168_s29  ;;  %s606_s10 = scalar_lea.hbm %s903_s7, 128 }
  0x2b   : > { %p607_p11 = scmp.ne.s32.totalorder %s903_s7, %s606_s10  ;;  %p608_p12 = pneg %p909_p2 }
  0x2c   : > { %s611_s27 = scalar_lea.hbm %s1048_s1, 256  ;;  %p612_p7 = scmp.lt.u32.totalorder %s903_s7, %s1048_s1 }
  0x2d   : > { %p609_p13 = pnand %p608_p12, %p607_p11  ;;  %p613_p10 = scmp.lt.u32.totalorder %s611_s27, %s606_s10 }
  0x2e   : > { %p615_p3 = scmp.lt.u32.totalorder %s606_s10, %s903_s7 }
  0x2f   : > { %p610_p0 = pneg %p609_p13  ;;  %p614_p6 = por %p613_p10, %p612_p7 }
  0x31   : > { %p616_p5 = por %p615_p3, %p614_p6 }
  0x33   : > { %p617_p9 = pnand %p616_p5, %p610_p0 }
  0x35   : > { %620 = shalt.err (!%p617_p9)
}
  0x36   : > { %s621_s29 = scalar_lea.vmem %s905_s8, 128  ;;  %s757_s5 = smov [#allocation6]  }
  0x37   : > { %p622_p11 = scmp.ne.s32.totalorder %s905_s8, %s621_s29  ;;  %s626_s6 = sshll.u32 %s757_s5, 4  ;;  %s627_s6 = int_to_ptr.vmem [resolvable:$false] %s626_s6 }
  0x38   : > { %s628_s21 = scalar_lea.vmem %s627_s6, 256  ;;  %p629_p1 = scmp.lt.s32.totalorder %s905_s8, %s627_s6 }
  0x39   : > { %p624_p13 = pnand %p622_p11, %p608_p12  ;;  %p630_p7 = scmp.lt.s32.totalorder %s628_s21, %s621_s29 }
  0x3b   : > { %p625_p4 = pneg %p624_p13  ;;  %p631_p10 = por %p630_p7, %p629_p1 }
  0x3d   : > { %p632_p6 = pnand %p631_p10, %p625_p4 }
  0x3f   : > { %635 = shalt.err (!%p632_p6)
}
  0x40   : > { %532 = dma.hbm_to_vmem [thread:$0]  (!%p909_p2), %s903_s7, 128, %s905_s8, %s169_s28  }
  0x41   : > { %191 = sbr.rel (%p834_p8) target bundleno = 535 (0x217), region = 28  ;;  %p1065_p9 = scmp.ne.s32.totalorder (!%p834_p8), %s1055_s20, 0 }
  0x48   : > { %717 = dma.done.wait (%p1065_p9), [#allocation5], 16  }
  0x49   : > { %719 = vsyncadd (%p1065_p9), [#allocation5], 4294967280  ;;  %s945_s10 = sand.u32 1, %s738_s13   ;;  %p1066_p1 = scmp.ne.s32.totalorder %s1057_s22, 0 }
  0x4a   : > { %s493_s11 = sshll.u32 %s945_s10, 3  ;;  %s198_s9 = scalar_lea.sflag [#allocation3], %s945_s10 }
  0x4b   : > { %s201_s26 = scalar_lea.vmem [#allocation6], %s493_s11 }
  0x4c   : > { %721 = dma.done.wait (%p1066_p1), %s198_s9, 128  }
  0x4d   : > { %723 = vsyncadd (%p1066_p1), %s198_s9, 4294967168 }
  0x4e   : > { %206 = sfence }
  0x4f   : > { %s233_s24 = sld [smem:[#allocation2]]  ;;  %s497_s7 = sld [smem:[#allocation2 + $0x1]]  ;;  %v232_v0 = vld [vmem:[%s201_s26] ss:$4 sm:$0x3]  ;;  %v255_v1 = vlaneseq  ;;  %vm265_vm0 = vcmask 1040384  }
  0x50   : > { %s499_s8 = sld [smem:[#allocation2 + $0x2]]  ;;  %s501_s20 = sld [smem:[#allocation2 + $0x3]]  ;;  %v496_v2 = vld [vmem:[%s201_s26 + $0x1] ss:$4 sm:$0x3] }
  0x51   : > { %v498_v4 = vld [vmem:[%s201_s26 + $0x2] ss:$4 sm:$0x3]  ;;  %v500_v7 = vld [vmem:[%s201_s26 + $0x3] ss:$4 sm:$0x3] }
  0x52   : > { %v953_v10 = vshrl.u32 %v255_v1, 7  ;;  %s494_s27 = sshll.u32 %s945_s10, 1  ;;  %vm309_vm1 = vcmp.lt.s32.totalorder %v255_v1, 256  ;;  %s510_s18 = sshll.u32 %s746_s15, 5 }
  0x53   : > { %s222_s4 = scalar_lea.vmem [#allocation7], %s494_s27  ;;  %s970_s21 = scalar_lea.hbm %s1049_s2, %s510_s18 }
  0x54   : > { %v257_v16 = vsub.s32 0, %v953_v10  ;;  %v261_v17 = vsub.s32 1, %v953_v10  ;;  %s340_s29 = sshll.u32 %s222_s4, 4  ;;  %s319_s11 = scalar_lea.sflag [#allocation4], %s945_s10  ;;  %s341_s29 = int_to_ptr.vmem [resolvable:$true] %s340_s29 }
  0x55   : > { %v234_v3 = vstv %s233_s24  ;;  %v239_v6 = vstv %s497_s7  ;;  %s636_s9 = scalar_lea.vmem %s341_s29, 32  ;;  %p1067_p8 = scmp.ne.s32.totalorder %s1063_s19, 0 }
  0x56   : > { %v235_v5 = vmul.f32 %v234_v3, %v232_v0  ;;  %v240_v8 = vmul.f32 %v496_v2, %v239_v6  ;;  %v245_v9 = vstv %s499_s8  ;;  %v251_v12 = vstv %s501_s20  ;;  %p637_p4 = scmp.ne.s32.totalorder %s341_s29, %s636_s9  ;;  %s758_s26 = smov [#allocation7]  }
  0x57   : > { %v246_v11 = vmul.f32 %v498_v4, %v245_v9  ;;  %v252_v14 = vmul.f32 %v500_v7, %v251_v12  ;;  %s640_s24 = sshll.u32 %s758_s26, 4  ;;  %s641_s24 = int_to_ptr.vmem [resolvable:$false] %s640_s24 }
  0x58   : > { %v241_v13 = vadd.f32 %v240_v8, %v235_v5  ;;  %p638_p2 = pnand %p637_p4, %p1067_p8  ;;  %s642_s7 = scalar_lea.vmem %s641_s24, 64 }
  0x59   : > { %p643_p0 = scmp.lt.s32.totalorder %s341_s29, %s641_s24  ;;  %p644_p3 = scmp.lt.s32.totalorder %s642_s7, %s636_s9 }
  0x5a   : > { %v247_v15 = vadd.f32 %v246_v11, %v241_v13  ;;  %p639_p12 = pneg %p638_p2 }
  0x5b   : > { %p645_p5 = por %p644_p3, %p643_p0 }
  0x5c   : > { %v253_v18 = vadd.f32 %v252_v14, %v247_v15 }
  0x5d   : > { %p646_p11 = pnand %p645_p5, %p639_p12 }
  0x5e   : > { %v258_v19 = vrot.slane %v253_v18, %v257_v16  ;;  %v262_v20 = vrot.slane %v253_v18, %v261_v17  ;;  %311 = vst.msk [vmem:[%s222_s4] sm:$0x3] %vm309_vm1, %v253_v18 }
  0x60   : > { %v266_v21 = vsel %vm265_vm0, %v258_v19, 0.0  ;;  %v267_v22 = vsel %vm265_vm0, %v262_v20, 0.0 }
  0x61   : > { %v268_v23 = vadd.f32 %v267_v22, %v266_v21 }
  0x63   : > { %269 = vadd.xlane.f32.xlu0 %v268_v23 }
  0xf0   : > { %v270_v24 = vpop.xlane.xlu0 %269 }
  0xf1   : > { %v271_v25 = vrot.slane %v270_v24, 4 }
  0xf3   : > { %v272_v26 = vadd.f32 %v271_v25, %v270_v24 }
  0xf5   : > { %v273_v27 = vrot.slane %v272_v26, 2 }
  0xf7   : > { %v274_v28 = vadd.f32 %v273_v27, %v272_v26 }
  0xf9   : > { %v275_v29 = vrot.slane %v274_v28, 1 }
  0xfb   : > { %v276_v30 = vadd.f32 %v275_v29, %v274_v28 }
  0xfd   : > { %511 = vpush %v276_v30 }
 0x12e   : > { %s512_s22 = spop %511 }
 0x12f   : > { %s280_s28 = smul.f32 0.00390625, %s512_s22 }
 0x131   : > { %v281_v31 = vstv %s280_s28 }
 0x132   : > { %v282_v32 = vsub.f32 %v253_v18, %v281_v31 }
 0x134   : > { %v283_v33 = vmul.f32 %v282_v32, %v282_v32 }
 0x136   : > { %v288_v34 = vrot.slane %v283_v33, %v257_v16  ;;  %v292_v35 = vrot.slane %v283_v33, %v261_v17 }
 0x138   : > { %v295_v36 = vsel %vm265_vm0, %v288_v34, 0.0  ;;  %v296_v37 = vsel %vm265_vm0, %v292_v35, 0.0 }
 0x139   : > { %v297_v38 = vadd.f32 %v296_v37, %v295_v36 }
 0x13b   : > { %298 = vadd.xlane.f32.xlu0 %v297_v38 }
 0x13c   : > { %649 = shalt.err (!%p646_p11)
}
 0x13d   : > { %s650_s8 = scalar_lea.hbm %s970_s21, 32  ;;  %s654_s28 = scalar_lea.hbm %s1049_s2, 64 }
 0x13e   : > { %p651_p13 = scmp.ne.s32.totalorder %s970_s21, %s650_s8  ;;  %p655_p6 = scmp.lt.u32.totalorder %s970_s21, %s1049_s2 }
 0x13f   : > { %p656_p9 = scmp.lt.u32.totalorder %s654_s28, %s650_s8  ;;  %p658_p4 = scmp.lt.u32.totalorder %s650_s8, %s970_s21 }
 0x140   : > { %p652_p7 = pnand %p651_p13, %p1067_p8 }
 0x141   : > { %p657_p1 = por %p656_p9, %p655_p6 }
 0x142   : > { %p653_p10 = pneg %p652_p7 }
 0x143   : > { %p659_p2 = por %p658_p4, %p657_p1 }
 0x145   : > { %p660_p12 = pnand %p659_p2, %p653_p10 }
 0x147   : > { %663 = shalt.err (!%p660_p12)
}
 0x148   : > { %521 = dma.vmem_to_hbm [thread:$0]  (%p1067_p8), %s341_s29, 32, %s970_s21, %s319_s11   ;;  %vm314_vm2 = vcmp.eq.s32.totalorder %v953_v10, 0 }
 0x149   : > { %s229_s6 = scalar_lea.vmem [#allocation8], %s494_s27  ;;  %s998_s21 = scalar_lea.hbm %s1050_s3, %s510_s18 }
 0x14a   : > { %s354_s9 = sshll.u32 %s229_s6, 4  ;;  %s324_s11 = scalar_lea.sflag [#allocation9], %s945_s10  ;;  %s1000_s9 = int_to_ptr.vmem [resolvable:$true] %s354_s9 }
 0x14b   : > { %s664_s27 = scalar_lea.vmem %s1000_s9, 32  ;;  %s759_s7 = smov [#allocation8]  }
 0x14c   : > { %p665_p0 = scmp.ne.s32.totalorder %s1000_s9, %s664_s27  ;;  %s668_s15 = sshll.u32 %s759_s7, 4  ;;  %s669_s15 = int_to_ptr.vmem [resolvable:$false] %s668_s15 }
 0x14d   : > { %s670_s8 = scalar_lea.vmem %s669_s15, 64  ;;  %p671_p11 = scmp.lt.s32.totalorder %s1000_s9, %s669_s15 }
 0x14e   : > { %p666_p3 = pnand %p665_p0, %p1067_p8  ;;  %p672_p13 = scmp.lt.s32.totalorder %s670_s8, %s664_s27 }
 0x150   : > { %p667_p5 = pneg %p666_p3  ;;  %p673_p7 = por %p672_p13, %p671_p11 }
 0x152   : > { %p674_p10 = pnand %p673_p7, %p667_p5 }
 0x1c8   : > { %v299_v39 = vpop.xlane.xlu0 %298 }
 0x1c9   : > { %v300_v40 = vrot.slane %v299_v39, 4 }
 0x1cb   : > { %v301_v41 = vadd.f32 %v300_v40, %v299_v39 }
 0x1cd   : > { %v302_v42 = vrot.slane %v301_v41, 2 }
 0x1cf   : > { %v303_v43 = vadd.f32 %v302_v42, %v301_v41 }
 0x1d1   : > { %v304_v44 = vrot.slane %v303_v43, 1 }
 0x1d3   : > { %v305_v45 = vadd.f32 %v304_v44, %v303_v43 }
 0x1d5   : > { %513 = vpush %v305_v45 }
 0x206   : > { %s514_s26 = spop %513 }
 0x207   : > { %v315_v46 = vstv %s514_s26 }
 0x208   : > { %v316_v47 = vsel %vm314_vm2, %v281_v31, %v315_v46 }
 0x209   : > { %317 = vst [vmem:[%s229_s6] sm:$0x3] %v316_v47 }
 0x20a   : > { %677 = shalt.err (!%p674_p10)
}
 0x20b   : > { %s678_s10 = scalar_lea.hbm %s998_s21, 32  ;;  %s682_s22 = scalar_lea.hbm %s1050_s3, 64 }
 0x20c   : > { %p679_p6 = scmp.ne.s32.totalorder %s998_s21, %s678_s10  ;;  %p683_p4 = scmp.lt.u32.totalorder %s998_s21, %s1050_s3 }
 0x20d   : > { %p684_p2 = scmp.lt.u32.totalorder %s682_s22, %s678_s10  ;;  %p686_p0 = scmp.lt.u32.totalorder %s678_s10, %s998_s21 }
 0x20e   : > { %p680_p9 = pnand %p679_p6, %p1067_p8 }
 0x20f   : > { %p685_p12 = por %p684_p2, %p683_p4 }
 0x210   : > { %p681_p1 = pneg %p680_p9 }
 0x211   : > { %p687_p3 = por %p686_p0, %p685_p12 }
 0x213   : > { %p688_p5 = pnand %p687_p3, %p681_p1 }
 0x215   : > { %691 = shalt.err (!%p688_p5)
}
 0x216   : > { %522 = dma.vmem_to_hbm [thread:$0]  (%p1067_p8), %s1000_s9, 32, %s998_s21, %s324_s11  }
 0x217 PF: > { %s366_s5 = sand.u32 1, %s734_s12   ;;  %p1068_p11 = scmp.ne.s32.totalorder %s1058_s23, 0 }
 0x218   : > { %p1069_p13 = scmp.ge.s32.totalorder %s754_s17, 2  ;;  %s367_s6 = scalar_lea.sflag [#allocation4], %s366_s5 }
 0x21a   : > { %p534_p7 = pnand %p1069_p13, %p1068_p11 }
 0x21c   : > { %725 = dma.done.wait (!%p534_p7), %s367_s6, 32  }
 0x21d   : > { %727 = vsyncadd (!%p534_p7), %s367_s6, 4294967264  ;;  %s376_s26 = scalar_lea.sflag [#allocation9], %s366_s5 }
 0x21e   : > { %729 = dma.done.wait (!%p534_p7), %s376_s26, 32  }
 0x21f   : > { %731 = vsyncadd (!%p534_p7), %s376_s26, 4294967264  ;;  %s24_s17 = sadd.s32 1, %s754_s17   ;;  %s1070_s12 = smov %s738_s13 }
 0x220   : > { %p21_p10 = scmp.ge.s32.totalorder %s24_s17, 4   ;;  %s1071_s13 = smov %s742_s14 }
 0x221   : > { %s1072_s14 = smov %s897_s30  ;;  %s1073_s15 = smov %s750_s16 }
 0x222   : > { %s1074_s16 = smov %s1076_s25  ;;  %23 = sbr.rel (!%p21_p10) target bundleno = 9 (0x9), region = 98 }
 0x229   :  { %381 = vsyncpa [#allocation3], 1 }
 0x22a   :  { %383 = vsyncpa [#allocation3 + $0x1], 1 }
 0x22b   :  { %384 = vsyncpa [#allocation4], 1 }
 0x22c   :  { %386 = vsyncpa [#allocation4 + $0x1], 1 }
 0x22d   :  { %387 = vsyncpa [#allocation9], 1 }
 0x22e   :  { %389 = vsyncpa [#allocation9 + $0x1], 1 }
 0x22f   :  { %390 = vsyncpa [#allocation5], 1 }
 0x230   :  { %392 = vsyncpa [#allocation5 + $0x1], 1 }

</bundles_post_ra>
